<compile_context>
chip_gen: v6e
topology: v6e:2x2x1
jax: 0.10.0
libtpu: 0.0.40
codegen_flags: <defaults>
</compile_context>

<pallas_src>
import functools

import jax
import jax.numpy as jnp
from jax.experimental import pallas as pl
from jax.experimental.pallas import tpu as pltpu

SUBLANE = 8          # f32 sublane height: batch tiles are multiples of this
MAX_TILE_B = 4096    # batch-tile cap (VMEM footprint stays at a few MiB)


def _round_up(n: int, m: int) -> int:
    return ((n + m - 1) // m) * m


def _fused_mlp_kernel(*refs, relu_flags, compute_dtype):
    """refs = (x_ref, w0, b0, w1, b1, ..., w_last_T, b_last, o_ref).

    Whole MLP in one body. Hidden layers use the MXU; the final layer
    (out_dim == 1, weight pre-transposed to (1, prev)) is a VPU multiply +
    cross-lane sum so the HBM store is one real column wide.
    """
    x_ref = refs[0]
    o_ref = refs[-1]
    wb = refs[1:-1]
    n_layers = len(relu_flags)

    h = x_ref[...].astype(jnp.float32)
    for i, relu in enumerate(relu_flags):
        w = wb[2 * i][...]
        b = wb[2 * i + 1][...]
        if i == n_layers - 1:
            # Final layer: w is (1, prev); out = sum_k h[:, k] * w[0, k] + b.
            h = jnp.sum(h * w, axis=-1, keepdims=True) + b
        else:
            # TODO(synk): on v6e/v7x set compute_dtype=jnp.bfloat16 (keep f32
            # accumulate) for ~3x MXU rate + halved x reads; default stays f32
            # to hold the 1e-4 tolerance vs the f32 reference.
            h = jnp.dot(h.astype(compute_dtype), w.astype(compute_dtype),
                        preferred_element_type=jnp.float32) + b
        if relu:
            h = jnp.maximum(h, 0.0)
    o_ref[...] = h.astype(o_ref.dtype)


def fused_mlp(x, params, relu_flags, tile_b, compute_dtype=jnp.float32):
    """x: (B8, D) f32 with B8 % 8 == 0 (true, unpadded feature width D).

    params: [(w, b), ...] unpadded; the FINAL layer's weight must already be
    transposed to shape (1, prev). Returns (B8, 1) f32.
    """
    B8, D = x.shape
    grid = (pl.cdiv(B8, tile_b),)  # remainder-aware: last tile is masked

    in_specs = [pl.BlockSpec((tile_b, D), lambda i: (i, 0))]
    flat_params = []
    flops = 0
    param_bytes = 0
    prev = D
    for w, b in params:
        # Full-array, constant-index blocks: resident in VMEM across the grid.
        in_specs.append(pl.BlockSpec(w.shape, lambda i: (0, 0)))
        in_specs.append(pl.BlockSpec(b.shape, lambda i: (0, 0)))
        flat_params.append(w)
        flat_params.append(b)
        out_dim = b.shape[-1]
        flops += 2 * B8 * prev * out_dim
        param_bytes += w.size * w.dtype.itemsize + b.size * b.dtype.itemsize
        prev = out_dim

    kernel = functools.partial(
        _fused_mlp_kernel,
        relu_flags=tuple(relu_flags),
        compute_dtype=compute_dtype,
    )
    return pl.pallas_call(
        kernel,
        out_shape=jax.ShapeDtypeStruct((B8, 1), jnp.float32),
        grid=grid,
        in_specs=in_specs,
        out_specs=pl.BlockSpec((tile_b, 1), lambda i: (i, 0)),
        compiler_params=pltpu.CompilerParams(
            dimension_semantics=("parallel",),
        ),
        cost_estimate=pl.CostEstimate(
            flops=flops,
            transcendentals=0,
            bytes_accessed=x.size * x.dtype.itemsize + B8 * 4 + param_bytes,
        ),
    )(x, *flat_params)


class DQNPallas:
    """Mirrors the PyTorch DQN: Linear/activation stack + final Linear(prev, 1)."""

    def __init__(self, input_dim, hidden_layers, activations, key,
                 compute_dtype=jnp.float32):
        self.input_dim = input_dim
        self.compute_dtype = compute_dtype
        self.params = []        # (w (in,out), b (1,out)) -- used by the pure-JAX reference
        self.relu_flags = []
        dims = list(hidden_layers) + [1]
        acts = list(activations) + ["linear"]  # final layer has no activation
        prev = input_dim
        for i, h in enumerate(dims):
            key, wk, bk = jax.random.split(key, 3)
            bound = 1.0 / (prev ** 0.5)  # torch.nn.Linear default init range
            w = jax.random.uniform(wk, (prev, h), jnp.float32, -bound, bound)
            b = jax.random.uniform(bk, (1, h), jnp.float32, -bound, bound)
            self.params.append((w, b))
            self.relu_flags.append(acts[i] == "relu")
            prev = h

        # Kernel-side params: identical, except the final (prev, 1) weight is
        # stored pre-transposed as (1, prev) so it is lane-dense and the kernel
        # never needs an in-body transpose.
        self.kernel_params = []
        for i, (w, b) in enumerate(self.params):
            if i == len(self.params) - 1:
                self.kernel_params.append((w.T, b))
            else:
                self.kernel_params.append((w, b))

        self._jit_forward = jax.jit(self._forward)

    def _forward(self, x):
        B, D = x.shape
        x = x.astype(jnp.float32)
        # Pad the batch only to the f32 sublane height; remainder tiles are
        # handled by the cdiv grid (masked last block), never rounded to tile_b.
        B8 = _round_up(B, SUBLANE)
        if B8 != B:
            x = jnp.pad(x, ((0, B8 - B), (0, 0)))
        # >= 2 grid steps when the batch allows (both TensorCores on v7x),
        # capped so per-step overhead is amortized while VMEM stays tiny.
        tile_b = min(MAX_TILE_B, _round_up(pl.cdiv(B8, 2), SUBLANE))
        tile_b = max(tile_b, SUBLANE)
        out = fused_mlp(x, self.kernel_params, self.relu_flags, tile_b,
                        compute_dtype=self.compute_dtype)
        return out[:B]

    def __call__(self, x):
        return self._jit_forward(x)

    def reference(self, x):
        """Pure-JAX reference of the same forward pass."""
        x = x.astype(jnp.float32)
        for (w, b), relu in zip(self.params, self.relu_flags):
            x = x @ w + b
            if relu:
                x = jnp.maximum(x, 0.0)
        return x


if __name__ == "__main__":
    key = jax.random.PRNGKey(0)
    key, xk, pk = jax.random.split(key, 3)

    batch = 8
    input_dim = 32
    hidden_layers = [64, 32]
    activations = ["relu", "relu"]

    model = DQNPallas(input_dim, hidden_layers, activations, pk)

    x = jax.random.normal(xk, (batch, input_dim), jnp.float32)
    out = jax.block_until_ready(model(x))
    ref = model.reference(x)
    assert out.shape == (batch, 1), out.shape
    assert jnp.allclose(out, ref, atol=1e-4, rtol=1e-4), "mismatch vs reference"

    # Exercise the remainder-aware path (partial last batch tile, 2-step grid).
    key, xk2 = jax.random.split(key)
    x2 = jax.random.normal(xk2, (20, input_dim), jnp.float32)
    out2 = jax.block_until_ready(model(x2))
    ref2 = model.reference(x2)
    assert out2.shape == (20, 1), out2.shape
    assert jnp.allclose(out2, ref2, atol=1e-4, rtol=1e-4), "mismatch (odd batch)"

    print("KERNEL_OK")
</pallas_src>

<mosaic_0001>
module attributes {stable_mosaic.version = 11 : i64} {
  func.func @_fused_mlp_kernel(%arg0: i32, %arg1: memref<8x32xf32, #tpu.memory_space<vmem>>, %arg2: memref<32x64xf32, #tpu.memory_space<vmem>>, %arg3: memref<1x64xf32, #tpu.memory_space<vmem>>, %arg4: memref<64x32xf32, #tpu.memory_space<vmem>>, %arg5: memref<1x32xf32, #tpu.memory_space<vmem>>, %arg6: memref<1x32xf32, #tpu.memory_space<vmem>>, %arg7: memref<1x1xf32, #tpu.memory_space<vmem>>, %arg8: memref<8x1xf32, #tpu.memory_space<vmem>>) attributes {dimension_semantics = [#tpu.dimension_semantics<parallel>], iteration_bounds = array<i64: 1>, scalar_prefetch = 0 : i64, scratch_operands = 0 : i64, tpu.core_type = #tpu.core_type<tc>, window_params = [{transform_indices = @transform_0, window_bounds = array<i64: 8, 32>}, {pipeline_mode = #tpu.pipeline_mode<synchronous>, transform_indices = @transform_1, window_bounds = array<i64: 32, 64>}, {pipeline_mode = #tpu.pipeline_mode<synchronous>, transform_indices = @transform_2, window_bounds = array<i64: 1, 64>}, {pipeline_mode = #tpu.pipeline_mode<synchronous>, transform_indices = @transform_3, window_bounds = array<i64: 64, 32>}, {pipeline_mode = #tpu.pipeline_mode<synchronous>, transform_indices = @transform_4, window_bounds = array<i64: 1, 32>}, {pipeline_mode = #tpu.pipeline_mode<synchronous>, transform_indices = @transform_5, window_bounds = array<i64: 1, 32>}, {pipeline_mode = #tpu.pipeline_mode<synchronous>, transform_indices = @transform_6, window_bounds = array<i64: 1, 1>}, {transform_indices = @transform_7, window_bounds = array<i64: 8, 1>}]} {
    %c0 = arith.constant 0 : index
    %c0_0 = arith.constant 0 : index
    %0 = vector.load %arg1[%c0, %c0_0] : memref<8x32xf32, #tpu.memory_space<vmem>>, vector<8x32xf32>
    %c0_1 = arith.constant 0 : index
    %c0_2 = arith.constant 0 : index
    %1 = vector.load %arg2[%c0_1, %c0_2] : memref<32x64xf32, #tpu.memory_space<vmem>>, vector<32x64xf32>
    %c0_3 = arith.constant 0 : index
    %c0_4 = arith.constant 0 : index
    %2 = vector.load %arg3[%c0_3, %c0_4] : memref<1x64xf32, #tpu.memory_space<vmem>>, vector<1x64xf32>
    %cst = arith.constant dense<0.000000e+00> : vector<8x64xf32>
    %3 = tpu.matmul %0, %1, %cst {dimension_numbers = #tpu.dot_dimension_numbers<[1], [0], [0], [1], [0, 0, 1, 1], [], []>} : vector<8x32xf32>, vector<32x64xf32>, vector<8x64xf32> -> vector<8x64xf32>
    %4 = vector.broadcast %2 : vector<1x64xf32> to vector<8x64xf32>
    %5 = arith.addf %3, %4 : vector<8x64xf32>
    %cst_5 = arith.constant 0.000000e+00 : f32
    %6 = vector.broadcast %cst_5 : f32 to vector<8x64xf32>
    %7 = arith.maximumf %5, %6 : vector<8x64xf32>
    %c0_6 = arith.constant 0 : index
    %c0_7 = arith.constant 0 : index
    %8 = vector.load %arg4[%c0_6, %c0_7] : memref<64x32xf32, #tpu.memory_space<vmem>>, vector<64x32xf32>
    %c0_8 = arith.constant 0 : index
    %c0_9 = arith.constant 0 : index
    %9 = vector.load %arg5[%c0_8, %c0_9] : memref<1x32xf32, #tpu.memory_space<vmem>>, vector<1x32xf32>
    %cst_10 = arith.constant dense<0.000000e+00> : vector<8x32xf32>
    %10 = tpu.matmul %7, %8, %cst_10 {dimension_numbers = #tpu.dot_dimension_numbers<[1], [0], [0], [1], [0, 0, 1, 1], [], []>} : vector<8x64xf32>, vector<64x32xf32>, vector<8x32xf32> -> vector<8x32xf32>
    %11 = vector.broadcast %9 : vector<1x32xf32> to vector<8x32xf32>
    %12 = arith.addf %10, %11 : vector<8x32xf32>
    %cst_11 = arith.constant 0.000000e+00 : f32
    %13 = vector.broadcast %cst_11 : f32 to vector<8x32xf32>
    %14 = arith.maximumf %12, %13 : vector<8x32xf32>
    %c0_12 = arith.constant 0 : index
    %c0_13 = arith.constant 0 : index
    %15 = vector.load %arg6[%c0_12, %c0_13] : memref<1x32xf32, #tpu.memory_space<vmem>>, vector<1x32xf32>
    %c0_14 = arith.constant 0 : index
    %c0_15 = arith.constant 0 : index
    %16 = vector.load %arg7[%c0_14, %c0_15] : memref<1x1xf32, #tpu.memory_space<vmem>>, vector<1x1xf32>
    %17 = vector.broadcast %15 : vector<1x32xf32> to vector<8x32xf32>
    %18 = arith.mulf %14, %17 : vector<8x32xf32>
    %cst_16 = arith.constant dense<0.000000e+00> : vector<8xf32>
    %19 = vector.multi_reduction <add>, %18, %cst_16 [1] : vector<8x32xf32> to vector<8xf32>
    %20 = vector.shape_cast %19 : vector<8xf32> to vector<8x1xf32>
    %21 = vector.broadcast %16 : vector<1x1xf32> to vector<8x1xf32>
    %22 = arith.addf %20, %21 : vector<8x1xf32>
    %c0_17 = arith.constant 0 : index
    %c0_18 = arith.constant 0 : index
    %23 = vector.load %arg8[%c0_17, %c0_18] : memref<8x1xf32, #tpu.memory_space<vmem>>, vector<8x1xf32>
    tpu.vector_store %arg8[%c0_17, %c0_18], %22 {strides = array<i32>} : memref<8x1xf32, #tpu.memory_space<vmem>>, vector<8x1xf32>,
    return
  }
  func.func @transform_0(%arg0: i32) -> (i32, i32) {
    %c0_i32 = arith.constant 0 : i32
    %c0_i32_0 = arith.constant 0 : i32
    return %arg0, %c0_i32 : i32, i32
  }
  func.func @transform_1(%arg0: i32) -> (i32, i32) {
    %c0_i32 = arith.constant 0 : i32
    %c0_i32_0 = arith.constant 0 : i32
    %c0_i32_1 = arith.constant 0 : i32
    return %c0_i32, %c0_i32_0 : i32, i32
  }
  func.func @transform_2(%arg0: i32) -> (i32, i32) {
    %c0_i32 = arith.constant 0 : i32
    %c0_i32_0 = arith.constant 0 : i32
    %c0_i32_1 = arith.constant 0 : i32
    return %c0_i32, %c0_i32_0 : i32, i32
  }
  func.func @transform_3(%arg0: i32) -> (i32, i32) {
    %c0_i32 = arith.constant 0 : i32
    %c0_i32_0 = arith.constant 0 : i32
    %c0_i32_1 = arith.constant 0 : i32
    return %c0_i32, %c0_i32_0 : i32, i32
  }
  func.func @transform_4(%arg0: i32) -> (i32, i32) {
    %c0_i32 = arith.constant 0 : i32
    %c0_i32_0 = arith.constant 0 : i32
    %c0_i32_1 = arith.constant 0 : i32
    return %c0_i32, %c0_i32_0 : i32, i32
  }
  func.func @transform_5(%arg0: i32) -> (i32, i32) {
    %c0_i32 = arith.constant 0 : i32
    %c0_i32_0 = arith.constant 0 : i32
    %c0_i32_1 = arith.constant 0 : i32
    return %c0_i32, %c0_i32_0 : i32, i32
  }
  func.func @transform_6(%arg0: i32) -> (i32, i32) {
    %c0_i32 = arith.constant 0 : i32
    %c0_i32_0 = arith.constant 0 : i32
    %c0_i32_1 = arith.constant 0 : i32
    return %c0_i32, %c0_i32_0 : i32, i32
  }
  func.func @transform_7(%arg0: i32) -> (i32, i32) {
    %c0_i32 = arith.constant 0 : i32
    %c0_i32_0 = arith.constant 0 : i32
    return %arg0, %c0_i32 : i32, i32
  }
}

</mosaic_0001>

<bundles_post_ra>
// kernel: _forward.1
= control target key start
LH: loop header
LB: loop body
LE: loop exit
PB: predicated region body
PF: predicated region fallthrough
CT: control target
= control target key end

     0   :  { %s465_s0 = inlined_call_operand.hbm [shape: f32[8,32], index: 0, kind: input, shape index: {}]   ;;  %s466_s1 = inlined_call_operand.hbm [shape: f32[32,64], index: 1, kind: input, shape index: {}]   ;;  %s467_s2 = inlined_call_operand.vmem [shape: f32[1,64], index: 2, kind: input, shape index: {}]   ;;  %s468_s3 = inlined_call_operand.hbm [shape: f32[64,32], index: 3, kind: input, shape index: {}]   ;;  %s469_s4 = inlined_call_operand.vmem [shape: f32[1,32], index: 4, kind: input, shape index: {}]   ;;  %s470_s5 = inlined_call_operand.vmem [shape: f32[1,32], index: 5, kind: input, shape index: {}]   ;;  %s471_s6 = inlined_call_operand.<no memory space> [shape: f32[1,1], index: 6, kind: input, shape index: {}]   ;;  %s472_s7 = inlined_call_operand.vmem [shape: f32[8,1], index: 7, kind: output, shape index: {}]  }
   0x1   :  { %v12_v0 = vstv %s471_s6 }
   0x2   :  { %13 = vst [vmem:[#allocation2] sm:$0x1] %v12_v0 }
   0x3   :  { %14 = vsyncpa [#allocation4], 0 }
   0x4   :  { %15 = vsyncpa [#allocation6], 0  ;;  %s392_s26 = smov [#allocation5]  }
   0x5   :  { %s31_s27 = sshll.u32 %s392_s26, 4  ;;  %s32_s27 = int_to_ptr.vmem [resolvable:$true] %s31_s27 }
   0x6   :  { %s336_s28 = scalar_lea.vmem %s32_s27, 512  ;;  %p341_p1 = scmp.lt.s32.totalorder %s32_s27, %s32_s27 }
   0x7   :  { %p337_p0 = scmp.ne.s32.totalorder %s32_s27, %s336_s28  ;;  %p342_p2 = scmp.lt.s32.totalorder %s336_s28, %s336_s28 }
   0x9   :  { %p343_p3 = por %p342_p2, %p341_p1 }
   0xb   :  { %p344_p4 = pnand %p343_p3, %p337_p0 }
   0xd   :  { %347 = shalt.err (!%p344_p4)
}
   0xe   :  { %s393_s29 = smov 128   ;;  %s394_s30 = smov 8  }
   0xf   :  { %37 = dma.hbm_to_vmem [thread:$0]  %s466_s1, 512, %s32_s27, [#allocation6], %s393_s29, %s393_s29, %s394_s30  }
  0x10   :  { %s395_s6 = smov [#allocation3]   ;;  %s396_s11 = smov [#allocation7]  }
  0x11   :  { %s22_s10 = sshll.u32 %s395_s6, 4  ;;  %s45_s12 = sshll.u32 %s396_s11, 4  ;;  %s23_s10 = int_to_ptr.vmem [resolvable:$true] %s22_s10  ;;  %s46_s12 = int_to_ptr.vmem [resolvable:$true] %s45_s12 }
  0x12   :  { %s356_s13 = scalar_lea.vmem %s23_s10, 128  ;;  %p361_p6 = scmp.lt.s32.totalorder %s23_s10, %s23_s10 }
  0x13   :  { %p357_p5 = scmp.ne.s32.totalorder %s23_s10, %s356_s13  ;;  %p362_p7 = scmp.lt.s32.totalorder %s356_s13, %s356_s13 }
  0x15   :  { %p363_p8 = por %p362_p7, %p361_p6 }
  0x17   :  { %p364_p9 = pnand %p363_p8, %p357_p5 }
  0x19   :  { %367 = shalt.err (!%p364_p9)
}
  0x1a   :  { %25 = dma.hbm_to_vmem [thread:$0]  %s465_s0, 128, %s23_s10, [#allocation4]  }
  0x1b   :  { %s376_s16 = scalar_lea.vmem %s46_s12, 1024  ;;  %p381_p11 = scmp.lt.s32.totalorder %s46_s12, %s46_s12 }
  0x1c   :  { %p377_p10 = scmp.ne.s32.totalorder %s46_s12, %s376_s16  ;;  %p382_p12 = scmp.lt.s32.totalorder %s376_s16, %s376_s16 }
  0x1e   :  { %p383_p13 = por %p382_p12, %p381_p11 }
  0x20   :  { %p384_p0 = pnand %p383_p13, %p377_p10 }
  0x22   :  { %387 = shalt.err (!%p384_p0)
}
  0x23   :  { %51 = dma.hbm_to_vmem [thread:$0]  %s468_s3, 1024, %s46_s12, [#allocation6], %s393_s29, %s393_s29, %s394_s30  }
  0x24   :  { %388 = dma.done.wait [#allocation4], 128  }
  0x25   :  { %389 = vsyncadd [#allocation4], 4294967168 }
  0x26   :  { %390 = dma.done.wait [#allocation6], 1536  }
  0x27   :  { %391 = vsyncadd [#allocation6], 4294965760  ;;  %v397_v1 = vmov 0.0   ;;  %vm398_vm0 = vmmov 0   ;;  %v71_v2 = vld [vmem:[#allocation5 + $0x18] sm:$0xff]  ;;  %v70_v3 = vld [vmem:[#allocation5 + $0x10] sm:$0xff] }
  0x28   :  { %291 = vmatprep.subr.mxu0 %v397_v1  ;;  %299 = vmatprep.mubr.msk.f32.mxu0 %vm398_vm0, %v397_v1  ;;  %v161_v4 = vld [vmem:[#allocation7 + $0x38] sm:$0xff]  ;;  %v69_v5 = vld [vmem:[#allocation5 + $0x8] sm:$0xff]  ;;  %v160_v6 = vld [vmem:[#allocation7 + $0x30] sm:$0xff]  ;;  %vm79_vm1 = vcmask 261120   ;;  %vm169_vm2 = vcmask 523264   ;;  %vm263_vm3 = vcmask 7168  }
  0x29   :  { %302 = vmatprep.subr.mxu1 %v397_v1  ;;  %318 = vmatprep.mubr.msk.f32.mxu1 %vm398_vm0, %v397_v1  ;;  %v159_v7 = vld [vmem:[#allocation7 + $0x28] sm:$0xff]  ;;  %v68_v8 = vld [vmem:[#allocation5] sm:$0xff]  ;;  %v67_v9 = vld [vmem:[#allocation3] sm:$0xff] }
  0x2a   :  { %292 = vmatpush3.msra.mxu0 %v71_v2  ;;  %303 = vmatpush3.msra.mxu1 %v161_v4  ;;  %v158_v10 = vld [vmem:[#allocation7 + $0x20] sm:$0xff]  ;;  %v157_v11 = vld [vmem:[#allocation7 + $0x18] sm:$0xff]  ;;  %v156_v12 = vld [vmem:[#allocation7 + $0x10] sm:$0xff] }
  0x2b   :  { %293 = vmatprep.subr.mxu0 %v397_v1  ;;  %304 = vmatprep.subr.mxu1 %v397_v1  ;;  %v155_v13 = vld [vmem:[#allocation7 + $0x8] sm:$0xff]  ;;  %v154_v14 = vld [vmem:[#allocation7] sm:$0xff]  ;;  %v271_v15 = vld [vmem:[%s467_s2] ss:$0 sm:$0xff] }
  0x2c   :  { %294 = vmatpush3.msra.mxu0 %v70_v3  ;;  %305 = vmatpush3.msra.mxu1 %v160_v6  ;;  %v273_v20 = vld [vmem:[%s469_s4] ss:$0 sm:$0xff] }
  0x2d   :  { %295 = vmatprep.subr.mxu0 %v397_v1  ;;  %306 = vmatprep.subr.mxu1 %v397_v1  ;;  %v275_v24 = vld [vmem:[%s470_s5] ss:$0 sm:$0xff] }
  0x2e   :  { %296 = vmatpush3.msra.mxu0 %v69_v5  ;;  %307 = vmatpush3.msra.mxu1 %v159_v7  ;;  %v276_v28 = vld [vmem:[#allocation2] ss:$0 sm:$0xff] }
  0x2f   :  { %297 = vmatprep.subr.mxu0 %v397_v1  ;;  %308 = vmatprep.subr.mxu1 %v397_v1 }
  0x30   :  { %298 = vmatpush3.msra.mxu0 %v68_v8  ;;  %309 = vmatpush3.msra.mxu1 %v158_v10 }
  0x31   :  { %300 = vmatmul.mubr.msk.f32.vlgmr.msra.gmra.mxu0 %vm79_vm1, %v67_v9  ;;  %310 = vmatprep.subr.mxu1 %v397_v1 }
  0x32   :  { %311 = vmatpush3.msra.mxu1 %v157_v11 }
  0x33   :  { %312 = vmatprep.subr.mxu1 %v397_v1 }
  0x34   :  { %313 = vmatpush3.msra.mxu1 %v156_v12 }
  0x35   :  { %314 = vmatprep.subr.mxu1 %v397_v1 }
  0x36   :  { %315 = vmatpush3.msra.mxu1 %v155_v13 }
  0x37   :  { %316 = vmatprep.subr.mxu1 %v397_v1 }
  0x38   :  { %317 = vmatpush3.msra.mxu1 %v154_v14 }
  0xf1   :  { %v149_v16 = vpop.f32.mrf.mxu0 }
  0xf2   :  { %v150_v17 = vadd.f32 %v271_v15, %v149_v16 }
  0xf3   :  { %v301_v18 = vpop.f32.mrf.mxu0 }
  0xf4   :  { %v153_v19 = vmax.f32 %v150_v17, 0.0 }
  0xf6   :  { %319 = vmatmul.mubr.msk.f32.vlgmr.msra.gmra.mxu1 %vm169_vm2, %v153_v19 }
 0x1b6   :  { %v239_v21 = vpop.f32.mrf.mxu1 }
 0x1b7   :  { %v240_v22 = vadd.f32 %v273_v20, %v239_v21 }
 0x1b8   :  { %v320_v23 = vpop.f32.mrf.mxu1 }
 0x1b9   :  { %v243_v25 = vmax.f32 %v240_v22, 0.0 }
 0x1bb   :  { %v252_v26 = vmul.f32 %v275_v24, %v243_v25 }
 0x1bd   :  { %v253_v27 = vsel %vm79_vm1, %v252_v26, 0.0 }
 0x1be   :  { %254 = vadd.xlane.f32.xlu0 %v253_v27 }
 0x247   :  { %v255_v29 = vpop.xlane.xlu0 %254 }
 0x248   :  { %v262_v30 = vadd.f32 %v276_v28, %v255_v29 }
 0x24a   :  { %264 = vst.msk [vmem:[%s472_s7] sm:$0xff] %vm263_vm3, %v262_v30 }
 0x24b   :  { %269 = vsyncpa [#allocation4], 1 }
 0x24c   :  { %270 = vsyncpa [#allocation6], 1 }

</bundles_post_ra>
